<compile_context>
chip_gen: v5e
topology: v5e:2x2
jax: 0.10.0
libtpu: 0.0.40
codegen_flags: <defaults>
</compile_context>

<pallas_src>
import functools

import jax
import jax.numpy as jnp
from jax.experimental import pallas as pl
from jax.experimental.pallas import tpu as pltpu


def _round_up(x, m):
    return (x + m - 1) // m * m


_SMALL_C = 16  # class counts <= this use the lane-packed class-major layout


def _wce_kernel(class_axis, p_ref, lab_ref, w_ref, out_ref, num_acc, den_acc):
    """Weighted-CE partial reduction for one tile.

    class_axis == 0: class-major layout, p_ref (C, TILE_N), lab_ref (1, TILE_N),
                     w_ref (C, 1)   -- batch dim on the lane axis (small C).
    class_axis == 1: row-major layout,  p_ref (TILE_N, C), lab_ref (TILE_N, 1),
                     w_ref (1, C)   -- class dim on the lane axis (general C).
    """

    @pl.when(pl.program_id(0) == 0)
    def _init():
        num_acc[...] = jnp.zeros_like(num_acc)
        den_acc[...] = jnp.zeros_like(den_acc)

    logits = p_ref[...].astype(jnp.float32)   # upcast in VMEM (bf16-friendly)
    labels = lab_ref[...]                     # int32; -1 marks padded rows
    w = w_ref[...].astype(jnp.float32)

    # Numerically stable log-sum-exp along the class axis.
    m = jnp.max(logits, axis=class_axis, keepdims=True)
    s = jnp.sum(jnp.exp(logits - m), axis=class_axis, keepdims=True)

    # One boolean label mask, reused for both masked reductions. No float
    # one-hot and no full logp tensor are materialized.
    cls = jax.lax.broadcasted_iota(jnp.int32, logits.shape, class_axis)
    mask = cls == labels
    label_logit = jnp.sum(jnp.where(mask, logits, 0.0),
                          axis=class_axis, keepdims=True)
    per_w = jnp.sum(jnp.where(mask, w, 0.0), axis=class_axis, keepdims=True)

    # -log p[label] = m + log(sum exp(logits - m)) - logits[label]
    per_nll = m + jnp.log(s) - label_logit

    # Padded rows have per_w == 0 -> contribute 0 to both sums.
    num_acc[...] += jnp.sum(per_w * per_nll, keepdims=True)
    den_acc[...] += jnp.sum(per_w, keepdims=True)

    @pl.when(pl.program_id(0) == pl.num_programs(0) - 1)
    def _finalize():
        out_ref[...] = num_acc[...] / den_acc[...]


def _wce_pallas_call(kernel, grid, in_specs, out_specs, *args):
    out = pl.pallas_call(
        kernel,
        out_shape=jax.ShapeDtypeStruct((1, 1), jnp.float32),
        grid_spec=pltpu.PrefetchScalarGridSpec(
            num_scalar_prefetch=0,
            grid=grid,
            in_specs=in_specs,
            out_specs=out_specs,
            scratch_shapes=[pltpu.VMEM((1, 1), jnp.float32),   # num accumulator
                            pltpu.VMEM((1, 1), jnp.float32)],  # den accumulator
        ),
        compiler_params=pltpu.CompilerParams(
            dimension_semantics=("arbitrary",)),   # reduction over the N grid
    )(*args)
    return out[0, 0]


def _wce_small_c(preds, labels, w):
    """Lane-packed path for small class counts: class-major (C, Npad) layout."""
    N, C = preds.shape
    tile_n = 2048 if N >= 2048 else _round_up(N, 128)   # lanes need mult. of 128
    n_pad = _round_up(N, tile_n)

    preds_t = jnp.pad(preds.T, ((0, 0), (0, n_pad - N)))                 # (C, Npad)
    labels_t = jnp.pad(labels.reshape(1, N), ((0, 0), (0, n_pad - N)),
                       constant_values=-1)                               # (1, Npad)
    w2 = w.reshape(C, 1)                                                 # (C, 1)

    grid = (n_pad // tile_n,)
    in_specs = [
        pl.BlockSpec((C, tile_n), lambda i: (0, i)),
        pl.BlockSpec((1, tile_n), lambda i: (0, i)),
        pl.BlockSpec((C, 1), lambda i: (0, 0)),
    ]
    out_specs = pl.BlockSpec((1, 1), lambda i: (0, 0))
    return _wce_pallas_call(functools.partial(_wce_kernel, 0),
                            grid, in_specs, out_specs,
                            preds_t, labels_t, w2)


def _wce_general(preds, labels, w):
    """General path: row-tiled (TILE_N, C) blocks with the class dim last."""
    N, C = preds.shape
    itemsize = jnp.dtype(preds.dtype).itemsize
    # ~2 MiB per preds block: double-buffered DMA + f32 temporaries stay well
    # inside the v5e 16 MiB default scoped-VMEM limit (and v7x's 64 MiB VMEM).
    rows_budget = max(8, (2 * 1024 * 1024) // max(C * itemsize, 1))
    tile_n = int(min(512, rows_budget, _round_up(N, 8)))
    tile_n = max(8, (tile_n // 8) * 8)
    n_pad = _round_up(N, tile_n)

    preds_p = jnp.pad(preds, ((0, n_pad - N), (0, 0)))                    # (Npad, C)
    labels_p = jnp.pad(labels.reshape(N, 1), ((0, n_pad - N), (0, 0)),
                       constant_values=-1)                                # (Npad, 1)
    w2 = w.reshape(1, C)                                                  # (1, C)

    grid = (n_pad // tile_n,)
    in_specs = [
        pl.BlockSpec((tile_n, C), lambda i: (i, 0)),
        pl.BlockSpec((tile_n, 1), lambda i: (i, 0)),
        pl.BlockSpec((1, C), lambda i: (0, 0)),
    ]
    out_specs = pl.BlockSpec((1, 1), lambda i: (0, 0))
    return _wce_pallas_call(functools.partial(_wce_kernel, 1),
                            grid, in_specs, out_specs,
                            preds_p, labels_p, w2)


def weighted_ce_loss(preds, labels, class_weights):
    """preds: (N, C) float (any float dtype), labels: (N,) int,
    class_weights: (C,) float -> scalar f32 weighted cross-entropy."""
    N, C = preds.shape
    labels = labels.astype(jnp.int32)
    w = class_weights.astype(jnp.float32)
    if C <= _SMALL_C:
        return _wce_small_c(preds, labels, w)
    return _wce_general(preds, labels, w)


class WeightedCELoss:
    """JAX/Pallas port of hw_as.loss.loss.WeightedCELoss."""

    def __init__(self, weights=(9, 1)):
        self.weights = jnp.asarray(weights, dtype=jnp.float32)

    def __call__(self, preds, labels, **kwargs):
        return weighted_ce_loss(preds, labels, self.weights)


def _reference(preds, labels, weights):
    # pure-JAX reference (matches torch.nn.CrossEntropyLoss with weight=)
    logp = jax.nn.log_softmax(preds.astype(jnp.float32), axis=-1)
    picked = jnp.take_along_axis(logp, labels[:, None], axis=-1)[:, 0]
    w = weights[labels]
    return jnp.sum(-w * picked) / jnp.sum(w)


if __name__ == "__main__":
    key = jax.random.PRNGKey(0)
    k1, k2, k3, k4 = jax.random.split(key, 4)

    # Case 1: the module as shipped — binary classification, weights [9, 1].
    N, C = 8, 2
    preds = jax.random.normal(k1, (N, C), dtype=jnp.float32)
    labels = jax.random.randint(k2, (N,), 0, C, dtype=jnp.int32)

    loss_mod = WeightedCELoss(weights=[9, 1])
    loss = loss_mod(preds, labels)
    jax.block_until_ready(loss)
    ref = _reference(preds, labels, loss_mod.weights)
    assert jnp.allclose(loss, ref, rtol=1e-5, atol=1e-5), (loss, ref)

    # Same inputs fed as bf16 (no host-side f32 cast; the kernel upcasts in VMEM).
    loss_bf16 = loss_mod(preds.astype(jnp.bfloat16), labels)
    jax.block_until_ready(loss_bf16)
    ref_bf16 = _reference(preds.astype(jnp.bfloat16).astype(jnp.float32),
                          labels, loss_mod.weights)
    assert jnp.allclose(loss_bf16, ref_bf16, rtol=1e-3, atol=1e-3), (loss_bf16, ref_bf16)

    # Case 2: larger class count exercises the row-tiled (class-last) path.
    N2, C2 = 24, 40
    preds2 = jax.random.normal(k3, (N2, C2), dtype=jnp.float32)
    labels2 = jax.random.randint(k4, (N2,), 0, C2, dtype=jnp.int32)
    w2 = jnp.linspace(0.5, 2.0, C2, dtype=jnp.float32)
    loss2 = weighted_ce_loss(preds2, labels2, w2)
    jax.block_until_ready(loss2)
    ref2 = _reference(preds2, labels2, w2)
    assert jnp.allclose(loss2, ref2, rtol=1e-5, atol=1e-5), (loss2, ref2)

    print("KERNEL_OK")
</pallas_src>

<mosaic_0001>
module attributes {stable_mosaic.version = 11 : i64} {
  func.func @_wce_kernel(%arg0: i32, %arg1: memref<2x128xf32, #tpu.memory_space<vmem>>, %arg2: memref<1x128xi32, #tpu.memory_space<vmem>>, %arg3: memref<2x1xf32, #tpu.memory_space<vmem>>, %arg4: memref<1x1xf32, #tpu.memory_space<vmem>>, %arg5: memref<1x1xf32, #tpu.memory_space<vmem>>, %arg6: memref<1x1xf32, #tpu.memory_space<vmem>>) attributes {dimension_semantics = [#tpu.dimension_semantics<arbitrary>], iteration_bounds = array<i64: 1>, scalar_prefetch = 0 : i64, scratch_operands = 2 : i64, tpu.core_type = #tpu.core_type<tc>, window_params = [{transform_indices = @transform_0, window_bounds = array<i64: 2, 128>}, {transform_indices = @transform_1, window_bounds = array<i64: 1, 128>}, {pipeline_mode = #tpu.pipeline_mode<synchronous>, transform_indices = @transform_2, window_bounds = array<i64: 2, 1>}, {pipeline_mode = #tpu.pipeline_mode<synchronous>, transform_indices = @transform_3, window_bounds = array<i64: 1, 1>}]} {
    %c0_i32 = arith.constant 0 : i32
    %0 = arith.cmpi eq, %arg0, %c0_i32 : i32
    %1 = arith.extui %0 : i1 to i32
    %c0_i32_0 = arith.constant 0 : i32
    %2 = arith.cmpi ne, %1, %c0_i32_0 : i32
    scf.if %2 {
      %cst_23 = arith.constant 0.000000e+00 : f32
      %49 = vector.broadcast %cst_23 : f32 to vector<1x1xf32>
      %c0_24 = arith.constant 0 : index
      %c0_25 = arith.constant 0 : index
      %50 = vector.load %arg5[%c0_24, %c0_25] : memref<1x1xf32, #tpu.memory_space<vmem>>, vector<1x1xf32>
      tpu.vector_store %arg5[%c0_24, %c0_25], %49 {strides = array<i32>} : memref<1x1xf32, #tpu.memory_space<vmem>>, vector<1x1xf32>,
      %cst_26 = arith.constant 0.000000e+00 : f32
      %51 = vector.broadcast %cst_26 : f32 to vector<1x1xf32>
      %c0_27 = arith.constant 0 : index
      %c0_28 = arith.constant 0 : index
      %52 = vector.load %arg6[%c0_27, %c0_28] : memref<1x1xf32, #tpu.memory_space<vmem>>, vector<1x1xf32>
      tpu.vector_store %arg6[%c0_27, %c0_28], %51 {strides = array<i32>} : memref<1x1xf32, #tpu.memory_space<vmem>>, vector<1x1xf32>,
    } else {
    }
    %c0 = arith.constant 0 : index
    %c0_1 = arith.constant 0 : index
    %3 = vector.load %arg1[%c0, %c0_1] : memref<2x128xf32, #tpu.memory_space<vmem>>, vector<2x128xf32>
    %c0_2 = arith.constant 0 : index
    %c0_3 = arith.constant 0 : index
    %4 = vector.load %arg2[%c0_2, %c0_3] : memref<1x128xi32, #tpu.memory_space<vmem>>, vector<1x128xi32>
    %c0_4 = arith.constant 0 : index
    %c0_5 = arith.constant 0 : index
    %5 = vector.load %arg3[%c0_4, %c0_5] : memref<2x1xf32, #tpu.memory_space<vmem>>, vector<2x1xf32>
    %cst = arith.constant dense<0xFF800000> : vector<128xf32>
    %6 = vector.multi_reduction <maximumf>, %3, %cst [0] : vector<2x128xf32> to vector<128xf32>
    %7 = vector.shape_cast %6 : vector<128xf32> to vector<1x128xf32>
    %8 = vector.broadcast %7 : vector<1x128xf32> to vector<2x128xf32>
    %9 = arith.subf %3, %8 : vector<2x128xf32>
    %10 = math.exp %9 : vector<2x128xf32>
    %cst_6 = arith.constant dense<0.000000e+00> : vector<128xf32>
    %11 = vector.multi_reduction <add>, %10, %cst_6 [0] : vector<2x128xf32> to vector<128xf32>
    %12 = vector.shape_cast %11 : vector<128xf32> to vector<1x128xf32>
    %13 = tpu.iota {dimensions = array<i32: 0>} : vector<2x128xi32>
    %14 = vector.broadcast %4 : vector<1x128xi32> to vector<2x128xi32>
    %15 = arith.cmpi eq, %13, %14 : vector<2x128xi32>
    %cst_7 = arith.constant 0.000000e+00 : f32
    %16 = vector.broadcast %cst_7 : f32 to vector<2x128xf32>
    %17 = arith.select %15, %3, %16 : vector<2x128xi1>, vector<2x128xf32>
    %cst_8 = arith.constant dense<0.000000e+00> : vector<128xf32>
    %18 = vector.multi_reduction <add>, %17, %cst_8 [0] : vector<2x128xf32> to vector<128xf32>
    %19 = vector.shape_cast %18 : vector<128xf32> to vector<1x128xf32>
    %cst_9 = arith.constant 0.000000e+00 : f32
    %20 = vector.shape_cast %5 : vector<2x1xf32> to vector<2x1xf32>
    %21 = vector.broadcast %20 : vector<2x1xf32> to vector<2x128xf32>
    %22 = vector.broadcast %cst_9 : f32 to vector<2x128xf32>
    %23 = arith.select %15, %21, %22 : vector<2x128xi1>, vector<2x128xf32>
    %cst_10 = arith.constant dense<0.000000e+00> : vector<128xf32>
    %24 = vector.multi_reduction <add>, %23, %cst_10 [0] : vector<2x128xf32> to vector<128xf32>
    %25 = vector.shape_cast %24 : vector<128xf32> to vector<1x128xf32>
    %26 = math.log %12 : vector<1x128xf32>
    %27 = arith.addf %7, %26 : vector<1x128xf32>
    %28 = arith.subf %27, %19 : vector<1x128xf32>
    %c0_11 = arith.constant 0 : index
    %c0_12 = arith.constant 0 : index
    %29 = vector.load %arg5[%c0_11, %c0_12] : memref<1x1xf32, #tpu.memory_space<vmem>>, vector<1x1xf32>
    %30 = arith.mulf %25, %28 : vector<1x128xf32>
    %31 = vector.shape_cast %30 : vector<1x128xf32> to vector<1x1x128xf32>
    %cst_13 = arith.constant dense<0.000000e+00> : vector<1xf32>
    %32 = vector.multi_reduction <add>, %31, %cst_13 [1, 2] : vector<1x1x128xf32> to vector<1xf32>
    %33 = vector.shape_cast %32 : vector<1xf32> to vector<1x1x1xf32>
    %34 = vector.extract %33[0, 0, 0] : f32 from vector<1x1x1xf32>
    %35 = vector.broadcast %34 : f32 to vector<1x1xf32>
    %36 = arith.addf %29, %35 : vector<1x1xf32>
    %c0_14 = arith.constant 0 : index
    %c0_15 = arith.constant 0 : index
    %37 = vector.load %arg5[%c0_14, %c0_15] : memref<1x1xf32, #tpu.memory_space<vmem>>, vector<1x1xf32>
    tpu.vector_store %arg5[%c0_14, %c0_15], %36 {strides = array<i32>} : memref<1x1xf32, #tpu.memory_space<vmem>>, vector<1x1xf32>,
    %c0_16 = arith.constant 0 : index
    %c0_17 = arith.constant 0 : index
    %38 = vector.load %arg6[%c0_16, %c0_17] : memref<1x1xf32, #tpu.memory_space<vmem>>, vector<1x1xf32>
    %39 = vector.shape_cast %25 : vector<1x128xf32> to vector<1x1x128xf32>
    %cst_18 = arith.constant dense<0.000000e+00> : vector<1xf32>
    %40 = vector.multi_reduction <add>, %39, %cst_18 [1, 2] : vector<1x1x128xf32> to vector<1xf32>
    %41 = vector.shape_cast %40 : vector<1xf32> to vector<1x1x1xf32>
    %42 = vector.extract %41[0, 0, 0] : f32 from vector<1x1x1xf32>
    %43 = vector.broadcast %42 : f32 to vector<1x1xf32>
    %44 = arith.addf %38, %43 : vector<1x1xf32>
    %c0_19 = arith.constant 0 : index
    %c0_20 = arith.constant 0 : index
    %45 = vector.load %arg6[%c0_19, %c0_20] : memref<1x1xf32, #tpu.memory_space<vmem>>, vector<1x1xf32>
    tpu.vector_store %arg6[%c0_19, %c0_20], %44 {strides = array<i32>} : memref<1x1xf32, #tpu.memory_space<vmem>>, vector<1x1xf32>,
    %c0_i32_21 = arith.constant 0 : i32
    %46 = arith.cmpi eq, %arg0, %c0_i32_21 : i32
    %47 = arith.extui %46 : i1 to i32
    %c0_i32_22 = arith.constant 0 : i32
    %48 = arith.cmpi ne, %47, %c0_i32_22 : i32
    scf.if %48 {
      %c0_23 = arith.constant 0 : index
      %c0_24 = arith.constant 0 : index
      %49 = vector.load %arg5[%c0_23, %c0_24] : memref<1x1xf32, #tpu.memory_space<vmem>>, vector<1x1xf32>
      %c0_25 = arith.constant 0 : index
      %c0_26 = arith.constant 0 : index
      %50 = vector.load %arg6[%c0_25, %c0_26] : memref<1x1xf32, #tpu.memory_space<vmem>>, vector<1x1xf32>
      %51 = arith.divf %49, %50 : vector<1x1xf32>
      %c0_27 = arith.constant 0 : index
      %c0_28 = arith.constant 0 : index
      %52 = vector.load %arg4[%c0_27, %c0_28] : memref<1x1xf32, #tpu.memory_space<vmem>>, vector<1x1xf32>
      tpu.vector_store %arg4[%c0_27, %c0_28], %51 {strides = array<i32>} : memref<1x1xf32, #tpu.memory_space<vmem>>, vector<1x1xf32>,
    } else {
    }
    return
  }
  func.func @transform_0(%arg0: i32) -> (i32, i32) {
    %c0_i32 = arith.constant 0 : i32
    %c0_i32_0 = arith.constant 0 : i32
    return %c0_i32, %arg0 : i32, i32
  }
  func.func @transform_1(%arg0: i32) -> (i32, i32) {
    %c0_i32 = arith.constant 0 : i32
    %c0_i32_0 = arith.constant 0 : i32
    return %c0_i32, %arg0 : i32, i32
  }
  func.func @transform_2(%arg0: i32) -> (i32, i32) {
    %c0_i32 = arith.constant 0 : i32
    %c0_i32_0 = arith.constant 0 : i32
    %c0_i32_1 = arith.constant 0 : i32
    return %c0_i32, %c0_i32_0 : i32, i32
  }
  func.func @transform_3(%arg0: i32) -> (i32, i32) {
    %c0_i32 = arith.constant 0 : i32
    %c0_i32_0 = arith.constant 0 : i32
    %c0_i32_1 = arith.constant 0 : i32
    return %c0_i32, %c0_i32_0 : i32, i32
  }
}

</mosaic_0001>

<bundles_post_ra>
// kernel: tpu_custom_call.1
= control target key start
LH: loop header
LB: loop body
LE: loop exit
PB: predicated region body
PF: predicated region fallthrough
CT: control target
= control target key end

     0   :  { %v181_v1 = vmov 0   ;;  %s225_s0 = inlined_call_operand.vmem [shape: f32[2,128], index: 0, kind: input, shape index: {}]   ;;  %s226_s1 = inlined_call_operand.vmem [shape: s32[1,128], index: 1, kind: input, shape index: {}]   ;;  %s227_s2 = inlined_call_operand.vmem [shape: f32[2,1], index: 2, kind: input, shape index: {}]   ;;  %s228_s3 = inlined_call_operand.hbm [shape: f32[1,1], index: 3, kind: output, shape index: {}]  }
   0x1   :  { %v24_v0 = vld [vmem:[%s227_s2] sm:$0x3]  ;;  %147 = vset.pattern.permute.xlu0 %v181_v1 }
   0x2   :  { %8 = vsyncpa [#allocation5], 0  ;;  %57 = vperm.xlu0 %147, %v24_v0   ;;  %vm25_vm0 = vcmask 1041408   ;;  %v22_v2 = vld [vmem:[%s225_s0] sm:$0x3]  ;;  %v43_v14 = vlaneseq  ;;  %vm74_vm2 = vcmask 1040384  }
   0x3   :  { %v26_v3 = vsel %vm25_vm0, %v22_v2, -inf  ;;  %v148_v18 = vld [vmem:[%s226_s1] ss:$0 sm:$0xff]  ;;  %vm19_vm3 = vcmask 0   ;;  %v182_v47 = vmov 0.0   ;;  %s183_s17 = smov [#allocation4]  }
   0x4   :  { %v27_v4 = vrot.slane %v26_v3, 4  ;;  %v44_v16 = vshrl.u32 %v43_v14, 7  ;;  %20 = vst.msk [vmem:[#allocation2] sm:$0x1] %vm19_vm3, %v182_v47  ;;  %s129_s18 = sshll.u32 %s183_s17, 4  ;;  %s131_s21 = sshll.u32 %s228_s3, 4  ;;  %s130_s18 = int_to_ptr.vmem [resolvable:$true] %s129_s18  ;;  %s132_s21 = int_to_ptr.hbm [resolvable:$true] %s131_s21 }
   0x5   :  { %21 = vst.msk [vmem:[#allocation3] sm:$0x1] %vm19_vm3, %v182_v47 }
   0x6   :  { %v28_v5 = vmax.f32 %v26_v3, %v27_v4  ;;  %vm46_vm1 = vcmp.eq.s32.totalorder %v44_v16, %v148_v18 }
   0x7   :  { %v47_v20 = vsel %vm46_vm1, %v22_v2, 0.0 }
   0x8   :  { %v29_v6 = vrot.slane %v28_v5, 2  ;;  %v48_v22 = vsel %vm25_vm0, %v47_v20, 0.0 }
   0x9   :  { %v49_v24 = vrot.slane %v48_v22, 4 }
   0xa   :  { %v30_v7 = vmax.f32 %v28_v5, %v29_v6 }
   0xb   :  { %v50_v26 = vadd.f32 %v49_v24, %v48_v22  ;;  %v72_v62 = vld [vmem:[#allocation2] sm:$0x1] }
   0xc   :  { %v31_v8 = vrot.slane %v30_v7, 1  ;;  %v89_v63 = vld [vmem:[#allocation3] sm:$0x1] }
   0xd   :  { %v51_v27 = vrot.slane %v50_v26, 2 }
   0xe   :  { %v32_v9 = vmax.f32 %v30_v7, %v31_v8 }
   0xf   :  { %v52_v28 = vadd.f32 %v51_v27, %v50_v26 }
  0x10   :  { %v33_v10 = vsub.f32 %v22_v2, %v32_v9 }
  0x11   :  { %v53_v34 = vrot.slane %v52_v28, 1 }
  0x12   :  { %v34_v11 = vmul.f32 1.442695, %v33_v10 }
  0x13   :  { %v54_v38 = vadd.f32 %v53_v34, %v52_v28 }
  0x14   :  { %149 = vpow2.f32 %v34_v11 }
  0x1a   :  { %v150_v12 = vpop.eup %149 }
  0x1b   :  { %v36_v13 = vsel %vm25_vm0, %v150_v12, 0.0 }
  0x1c   :  { %v37_v15 = vrot.slane %v36_v13, 4 }
  0x1e   :  { %v38_v17 = vadd.f32 %v37_v15, %v36_v13 }
  0x20   :  { %v39_v19 = vrot.slane %v38_v17, 2 }
  0x22   :  { %v40_v21 = vadd.f32 %v39_v19, %v38_v17 }
  0x24   :  { %v41_v23 = vrot.slane %v40_v21, 1 }
  0x26   :  { %v42_v25 = vadd.f32 %v41_v23, %v40_v21 }
  0x28   :  { %151 = vlog2.f32 %v42_v25 }
  0x2e   :  { %v152_v29 = vpop.eup %151 }
  0x2f   :  { %v69_v35 = vmul.f32 0.6931472, %v152_v29 }
  0x31   :  { %v70_v39 = vadd.f32 %v69_v35, %v32_v9 }
  0x33   :  { %v71_v42 = vsub.f32 %v70_v39, %v54_v38 }
  0x74   :  { %v58_v30 = vpop.permute.xlu0 %57 }
  0x75   :  { %v60_v31 = vsel %vm46_vm1, %v58_v30, 0.0 }
  0x76   :  { %v61_v32 = vsel %vm25_vm0, %v60_v31, 0.0 }
  0x77   :  { %v62_v33 = vrot.slane %v61_v32, 4 }
  0x79   :  { %v63_v36 = vadd.f32 %v62_v33, %v61_v32 }
  0x7b   :  { %v64_v37 = vrot.slane %v63_v36, 2 }
  0x7d   :  { %v65_v40 = vadd.f32 %v64_v37, %v63_v36 }
  0x7f   :  { %v66_v41 = vrot.slane %v65_v40, 1 }
  0x81   :  { %v67_v43 = vadd.f32 %v66_v41, %v65_v40 }
  0x83   :  { %v90_v44 = vsel %vm74_vm2, %v67_v43, 0.0  ;;  %v73_v45 = vmul.f32 %v71_v42, %v67_v43 }
  0x84   :  { %91 = vadd.xlane.f32.xlu1 %v90_v44 }
  0x85   :  { %v75_v46 = vsel %vm74_vm2, %v73_v45, 0.0 }
  0x86   :  { %76 = vadd.xlane.f32.xlu0 %v75_v46 }
  0xf7   :  { %v92_v48 = vpop.xlane.xlu1 %91 }
  0xf8   :  { %v93_v49 = vrot.slane %v92_v48, 4 }
  0xf9   :  { %v77_v50 = vpop.xlane.xlu0 %76 }
  0xfa   :  { %v94_v51 = vadd.f32 %v93_v49, %v92_v48  ;;  %v78_v52 = vrot.slane %v77_v50, 4 }
  0xfc   :  { %v95_v53 = vrot.slane %v94_v51, 2  ;;  %v79_v54 = vadd.f32 %v78_v52, %v77_v50 }
  0xfe   :  { %v96_v55 = vadd.f32 %v95_v53, %v94_v51  ;;  %v80_v56 = vrot.slane %v79_v54, 2 }
 0x100   :  { %v81_v57 = vadd.f32 %v80_v56, %v79_v54  ;;  %v97_v58 = vrot.slane %v96_v55, 1 }
 0x102   :  { %v82_v59 = vrot.slane %v81_v57, 1  ;;  %v98_v61 = vadd.f32 %v97_v58, %v96_v55 }
 0x104   :  { %v83_v60 = vadd.f32 %v82_v59, %v81_v57 }
 0x106   :  { %140 = vpush %v83_v60 }
 0x107   :  { %142 = vpush %v98_v61 }
 0x137   :  { %s141_s1 = spop %140 }
 0x138   :  { %v85_v0 = vstv %s141_s1  ;;  %s143_s16 = spop %142 }
 0x139   :  { %v86_v1 = vadd.f32 %v85_v0, %v72_v62  ;;  %v100_v2 = vstv %s143_s16 }
 0x13a   :  { %v101_v3 = vadd.f32 %v100_v2, %v89_v63 }
 0x13b   :  { %88 = vst.msk [vmem:[#allocation2] sm:$0x1] %vm19_vm3, %v86_v1 }
 0x13c   :  { %102 = vst.msk [vmem:[#allocation3] sm:$0x1] %vm19_vm3, %v101_v3 }
 0x142   :  { %v106_v14 = vld [vmem:[#allocation2] sm:$0x1] }
 0x143   :  { %v107_v4 = vld [vmem:[#allocation3] sm:$0x1] }
 0x144   :  { %153 = vrcp.f32 %v107_v4  ;;  %v119_v8 = vand.u32 2147483648, %v107_v4  ;;  %v117_v10 = vand.u32 2147483647, %v107_v4  ;;  %vm113_vm5 = vweird.f32 %v107_v4 }
 0x146   :  { %v120_v12 = vor.u32 1.1754944e-38, %v119_v8  ;;  %vm118_vm7 = vcmp.eq.f32.partialorder %v117_v10, 8.507059e+37 }
 0x14a   :  { %v154_v5 = vpop.eup %153 }
 0x14b   :  { %v109_v6 = vmul.f32 %v154_v5, %v107_v4  ;;  %vm114_vm4 = vweird.f32 %v154_v5 }
 0x14c   :  { %vm115_vm6 = vmor %vm113_vm5, %vm114_vm4 }
 0x14d   :  { %v110_v7 = vsub.f32 1.0, %v109_v6 }
 0x14f   :  { %v111_v9 = vmul.f32 %v154_v5, %v110_v7 }
 0x151   :  { %v112_v11 = vadd.f32 %v154_v5, %v111_v9 }
 0x153   :  { %v116_v13 = vsel %vm115_vm6, %v154_v5, %v112_v11 }
 0x154   :  { %v121_v15 = vsel %vm118_vm7, %v120_v12, %v116_v13 }
 0x155   :  { %v122_v16 = vmul.f32 %v121_v15, %v106_v14 }
 0x157   :  { %123 = vst.msk [vmem:[#allocation4] sm:$0x1] %vm19_vm3, %v122_v16 }
 0x158   :  { %134 = dma.vmem_to_hbm [thread:$0]  %s130_s18, 16, %s132_s21, [#allocation5]  }
 0x159   :  { %179 = dma.done.wait [#allocation5], 16  }
 0x15a   :  { %180 = vsyncadd [#allocation5], 4294967280 }
 0x15b   :  { %139 = vsyncpa [#allocation5], 1 }

</bundles_post_ra>
